<compile_context>
chip_gen: v7x
topology: tpu7x:2x2x1
jax: 0.10.0
libtpu: 0.0.40
codegen_flags: <defaults>
</compile_context>

<pallas_src>
import jax
import jax.numpy as jnp
from jax import lax
from jax.experimental import pallas as pl
from jax.experimental.pallas import tpu as pltpu


def _round_up(x, m):
    return (x + m - 1) // m * m


def _select_tiles(M, N, K, C, budget_bytes):
    """Pick (tm, tn, tk) minimizing HBM traffic under a VMEM byte budget."""
    tm_cands = [c for c in (512, 256, 128, 64, 32, 16, 8) if M % c == 0]
    tn_cands = [c for c in (1024, 512, 256, 128) if N % c == 0]
    tk_cands = sorted({c for c in (K, 1024, 512, 256, 128) if K % c == 0},
                      reverse=True)

    def vmem_bytes(tm, tn, tk):
        w_bufs = 3 if (K // tk) >= 3 else 2        # Buffered(3) on W when deep K
        return 4 * (2 * tm * tk        # x       (double-buffered)
                    + w_bufs * tk * tn  # W^T
                    + 2 * tn            # bias
                    + 2 * C * tn        # embedding columns
                    + 2 * tm            # class ids
                    + 2 * tm * tn)      # output block

    best = None
    for tm in tm_cands:
        for tn in tn_cands:
            for tk in tk_cands:
                if vmem_bytes(tm, tn, tk) > budget_bytes:
                    continue
                # HBM traffic: W streamed once per M-tile row, x once per N-tile col.
                traffic = (M // tm) * K * N + (N // tn) * M * K
                key = (traffic, K // tk, -(tm * tn))
                if best is None or key < best[1]:
                    best = ((tm, tn, tk), key)

    if best is None:                                # pathological: smallest legal tiles
        tm, tn, tk = tm_cands[-1], tn_cands[-1], tk_cands[-1]
    else:
        tm, tn, tk = best[0]

    # v7x has 2 TensorCores: expose >= 2 parallel blocks when possible
    # (splitting tn only adds cheap x re-reads, never extra W traffic).
    if (M // tm) * (N // tn) < 2:
        for cand in tn_cands:
            if cand < tn:
                tn = cand
                break
    return tm, tn, tk


def _gamma(y_ref, emb_ref):
    """gamma = embed[y] for this tile, via a lane-dense one-hot matmul against
    the resident (C, tn) embedding column block (gather stays on-chip)."""
    y_tile = y_ref[...]                                           # (tm, 1) int32
    n_cls = emb_ref.shape[0]
    onehot = (y_tile == lax.broadcasted_iota(
        jnp.int32, (y_tile.shape[0], n_cls), 1)).astype(jnp.float32)
    return jnp.dot(onehot, emb_ref[...], preferred_element_type=jnp.float32)


def _cond_linear_single_k_kernel(x_ref, w_ref, b_ref, emb_ref, y_ref, o_ref):
    """Single K pass: whole reduction in one MXU call, no accumulator."""
    acc = jnp.dot(x_ref[...], w_ref[...], preferred_element_type=jnp.float32)
    o_ref[...] = ((acc + b_ref[...]) * _gamma(y_ref, emb_ref)).astype(o_ref.dtype)


def _cond_linear_multi_k_kernel(x_ref, w_ref, b_ref, emb_ref, y_ref, o_ref):
    """K-tiled path: accumulate directly into the resident f32 output block."""
    k = pl.program_id(2)

    @pl.when(k == 0)
    def _init():
        o_ref[...] = jnp.zeros_like(o_ref)

    o_ref[...] += jnp.dot(x_ref[...], w_ref[...],
                          preferred_element_type=jnp.float32)

    @pl.when(k == pl.num_programs(2) - 1)
    def _epilogue():
        o_ref[...] = (o_ref[...] + b_ref[...]) * _gamma(y_ref, emb_ref)


def conditional_linear(x, lin_w, lin_b, embed_w, y, *, use_bf16=False):
    """out = (x @ lin_w.T + lin_b) * embed_w[y]

    x:       (B, num_in)            float32
    lin_w:   (num_out, num_in)      float32   (native nn.Linear layout)
    lin_b:   (num_out,)             float32
    embed_w: (num_classes, num_out) float32
    y:       (B,)                   int32
    returns: (B, num_out)           float32
    """
    B, num_in = x.shape
    num_out = lin_w.shape[0]
    num_classes = embed_w.shape[0]

    # Padded, alignment-friendly extents (lane-dense N and C; sublane-aligned M).
    M = _round_up(B, 8)
    K = _round_up(num_in, 128)
    N = _round_up(num_out, 128)
    C = _round_up(num_classes, 128)

    # Per-generation VMEM budget (v5e/v6e: 128 MiB physical, v7x: 64 MiB per TC).
    try:
        vmem_cap = pltpu.get_tpu_info().vmem_capacity_bytes
    except Exception:
        vmem_cap = 64 << 20
    vmem_limit = min(int(vmem_cap * 0.75), 96 << 20)
    budget = int(vmem_limit * 0.8)

    tm, tn, tk = _select_tiles(M, N, K, C, budget)

    # Pad only when the static shapes are actually ragged (zeros are exact
    # no-ops for the matmul / bias; padded rows & cols are sliced off below).
    xp = x if (M == B and K == num_in) else jnp.pad(
        x, ((0, M - B), (0, K - num_in)))
    wt = lin_w.T                                    # one-time (num_in, num_out)
    wp = wt if (K == num_in and N == num_out) else jnp.pad(
        wt, ((0, K - num_in), (0, N - num_out)))
    bp = (lin_b if N == num_out else jnp.pad(lin_b, (0, N - num_out))).reshape(1, N)
    ep = embed_w if (C == num_classes and N == num_out) else jnp.pad(
        embed_w, ((0, C - num_classes), (0, N - num_out)))
    yi = y.astype(jnp.int32)
    yp = (yi if M == B else jnp.pad(yi, (0, M - B))).reshape(M, 1)

    if use_bf16:
        # bf16 matmul path: 2x less x/W DMA, full-rate MXU; ~1e-2 rel. error.
        xp = xp.astype(jnp.bfloat16)
        wp = wp.astype(jnp.bfloat16)

    nk = K // tk
    if nk == 1:
        # Whole reduction fits one block: 2-D grid, single-pass kernel.
        grid = (M // tm, N // tn)
        in_specs = [
            pl.BlockSpec((tm, K), lambda i, j: (i, 0)),     # x (full K)
            pl.BlockSpec((K, tn), lambda i, j: (0, j)),     # W^T (full K)
            pl.BlockSpec((1, tn), lambda i, j: (0, j)),     # bias
            pl.BlockSpec((C, tn), lambda i, j: (0, j)),     # embed columns
            pl.BlockSpec((tm, 1), lambda i, j: (i, 0)),     # class ids
        ]
        out_specs = pl.BlockSpec((tm, tn), lambda i, j: (i, j))
        dims = ("parallel", "parallel")
        kernel = _cond_linear_single_k_kernel
    else:
        w_spec = (pl.BlockSpec((tk, tn), lambda i, j, k: (k, j),
                               pipeline_mode=pl.Buffered(3))
                  if nk >= 3 else
                  pl.BlockSpec((tk, tn), lambda i, j, k: (k, j)))
        grid = (M // tm, N // tn, nk)
        in_specs = [
            pl.BlockSpec((tm, tk), lambda i, j, k: (i, k)),  # x
            w_spec,                                          # W^T
            pl.BlockSpec((1, tn), lambda i, j, k: (0, j)),   # bias
            pl.BlockSpec((C, tn), lambda i, j, k: (0, j)),   # embed columns
            pl.BlockSpec((tm, 1), lambda i, j, k: (i, 0)),   # class ids
        ]
        out_specs = pl.BlockSpec((tm, tn), lambda i, j, k: (i, j))
        dims = ("parallel", "parallel", "arbitrary")
        kernel = _cond_linear_multi_k_kernel

    grid_spec = pltpu.PrefetchScalarGridSpec(
        num_scalar_prefetch=0,
        grid=grid,
        in_specs=in_specs,
        out_specs=out_specs,
    )

    out_p = pl.pallas_call(
        kernel,
        out_shape=jax.ShapeDtypeStruct((M, N), jnp.float32),
        grid_spec=grid_spec,
        compiler_params=pltpu.CompilerParams(
            dimension_semantics=dims, vmem_limit_bytes=vmem_limit),
    )(xp, wp, bp, ep, yp)

    if M == B and N == num_out:
        return out_p
    return out_p[:B, :num_out]


if __name__ == "__main__":
    # Small, module-consistent shapes.
    batch, num_in, num_out, num_classes = 8, 32, 64, 10

    key = jax.random.PRNGKey(0)
    k_x, k_y, k_w, k_b, k_e = jax.random.split(key, 5)

    # Inputs
    x = jax.random.normal(k_x, (batch, num_in), dtype=jnp.float32)
    y = jax.random.randint(k_y, (batch,), 0, num_classes, dtype=jnp.int32)

    # Deterministic parameter init (mirrors nn.Linear default + embed.uniform_()).
    bound = 1.0 / jnp.sqrt(jnp.float32(num_in))
    lin_w = jax.random.uniform(k_w, (num_out, num_in), jnp.float32, -bound, bound)
    lin_b = jax.random.uniform(k_b, (num_out,), jnp.float32, -bound, bound)
    embed_w = jax.random.uniform(k_e, (num_classes, num_out), jnp.float32, 0.0, 1.0)

    out = conditional_linear(x, lin_w, lin_b, embed_w, y)
    out = jax.block_until_ready(out)

    # Reference check (pure JAX) to validate semantics.
    ref = (x @ lin_w.T + lin_b) * jnp.take(embed_w, y, axis=0)
    assert out.shape == (batch, num_out)
    assert jnp.allclose(out, ref, atol=1e-5, rtol=1e-5)

    print("KERNEL_OK")
</pallas_src>

<mosaic_0001>
module attributes {stable_mosaic.version = 11 : i64} {
  func.func @_cond_linear_single_k_kernel(%arg0: i32, %arg1: i32, %arg2: memref<8x128xf32, #tpu.memory_space<vmem>>, %arg3: memref<128x128xf32, #tpu.memory_space<vmem>>, %arg4: memref<1x128xf32, #tpu.memory_space<vmem>>, %arg5: memref<128x128xf32, #tpu.memory_space<vmem>>, %arg6: memref<8x1xi32, #tpu.memory_space<vmem>>, %arg7: memref<8x128xf32, #tpu.memory_space<vmem>>) attributes {dimension_semantics = [#tpu.dimension_semantics<parallel>, #tpu.dimension_semantics<parallel>], iteration_bounds = array<i64: 1, 1>, scalar_prefetch = 0 : i64, scratch_operands = 0 : i64, tpu.core_type = #tpu.core_type<tc>, window_params = [{transform_indices = @transform_0, window_bounds = array<i64: 8, 128>}, {transform_indices = @transform_1, window_bounds = array<i64: 128, 128>}, {transform_indices = @transform_2, window_bounds = array<i64: 1, 128>}, {transform_indices = @transform_3, window_bounds = array<i64: 128, 128>}, {transform_indices = @transform_4, window_bounds = array<i64: 8, 1>}, {transform_indices = @transform_5, window_bounds = array<i64: 8, 128>}]} {
    %c0 = arith.constant 0 : index
    %c0_0 = arith.constant 0 : index
    %0 = vector.load %arg2[%c0, %c0_0] : memref<8x128xf32, #tpu.memory_space<vmem>>, vector<8x128xf32>
    %c0_1 = arith.constant 0 : index
    %c0_2 = arith.constant 0 : index
    %1 = vector.load %arg3[%c0_1, %c0_2] : memref<128x128xf32, #tpu.memory_space<vmem>>, vector<128x128xf32>
    %cst = arith.constant dense<0.000000e+00> : vector<8x128xf32>
    %2 = tpu.matmul %0, %1, %cst {dimension_numbers = #tpu.dot_dimension_numbers<[1], [0], [0], [1], [0, 0, 1, 1], [], []>} : vector<8x128xf32>, vector<128x128xf32>, vector<8x128xf32> -> vector<8x128xf32>
    %c0_3 = arith.constant 0 : index
    %c0_4 = arith.constant 0 : index
    %3 = vector.load %arg4[%c0_3, %c0_4] : memref<1x128xf32, #tpu.memory_space<vmem>>, vector<1x128xf32>
    %4 = vector.broadcast %3 : vector<1x128xf32> to vector<8x128xf32>
    %5 = arith.addf %2, %4 : vector<8x128xf32>
    %c0_5 = arith.constant 0 : index
    %c0_6 = arith.constant 0 : index
    %6 = vector.load %arg6[%c0_5, %c0_6] : memref<8x1xi32, #tpu.memory_space<vmem>>, vector<8x1xi32>
    %7 = tpu.iota {dimensions = array<i32: 1>} : vector<8x128xi32>
    %8 = vector.broadcast %6 : vector<8x1xi32> to vector<8x128xi32>
    %9 = arith.cmpi eq, %8, %7 : vector<8x128xi32>
    %10 = arith.extui %9 : vector<8x128xi1> to vector<8x128xi32>
    %11 = arith.sitofp %10 : vector<8x128xi32> to vector<8x128xf32>
    %c0_7 = arith.constant 0 : index
    %c0_8 = arith.constant 0 : index
    %12 = vector.load %arg5[%c0_7, %c0_8] : memref<128x128xf32, #tpu.memory_space<vmem>>, vector<128x128xf32>
    %cst_9 = arith.constant dense<0.000000e+00> : vector<8x128xf32>
    %13 = tpu.matmul %11, %12, %cst_9 {dimension_numbers = #tpu.dot_dimension_numbers<[1], [0], [0], [1], [0, 0, 1, 1], [], []>} : vector<8x128xf32>, vector<128x128xf32>, vector<8x128xf32> -> vector<8x128xf32>
    %14 = arith.mulf %5, %13 : vector<8x128xf32>
    %c0_10 = arith.constant 0 : index
    %c0_11 = arith.constant 0 : index
    %15 = vector.load %arg7[%c0_10, %c0_11] : memref<8x128xf32, #tpu.memory_space<vmem>>, vector<8x128xf32>
    tpu.vector_store %arg7[%c0_10, %c0_11], %14 {strides = array<i32>} : memref<8x128xf32, #tpu.memory_space<vmem>>, vector<8x128xf32>,
    return
  }
  func.func @transform_0(%arg0: i32, %arg1: i32) -> (i32, i32) {
    %c0_i32 = arith.constant 0 : i32
    %c0_i32_0 = arith.constant 0 : i32
    return %arg0, %c0_i32 : i32, i32
  }
  func.func @transform_1(%arg0: i32, %arg1: i32) -> (i32, i32) {
    %c0_i32 = arith.constant 0 : i32
    %c0_i32_0 = arith.constant 0 : i32
    return %c0_i32, %arg1 : i32, i32
  }
  func.func @transform_2(%arg0: i32, %arg1: i32) -> (i32, i32) {
    %c0_i32 = arith.constant 0 : i32
    %c0_i32_0 = arith.constant 0 : i32
    return %c0_i32, %arg1 : i32, i32
  }
  func.func @transform_3(%arg0: i32, %arg1: i32) -> (i32, i32) {
    %c0_i32 = arith.constant 0 : i32
    %c0_i32_0 = arith.constant 0 : i32
    return %c0_i32, %arg1 : i32, i32
  }
  func.func @transform_4(%arg0: i32, %arg1: i32) -> (i32, i32) {
    %c0_i32 = arith.constant 0 : i32
    %c0_i32_0 = arith.constant 0 : i32
    return %arg0, %c0_i32 : i32, i32
  }
  func.func @transform_5(%arg0: i32, %arg1: i32) -> (i32, i32) {
    %c0_i32 = arith.constant 0 : i32
    return %arg0, %arg1 : i32, i32
  }
}

</mosaic_0001>

<bundles_post_ra>
// kernel: tpu_custom_call.1
= control target key start
LH: loop header
LB: loop body
LE: loop exit
PB: predicated region body
PF: predicated region fallthrough
CT: control target
= control target key end

     0   :  { %10 = vsyncpa [#allocation3], 0  ;;  %s595_s0 = inlined_call_operand.vmem [shape: f32[8,128], index: 0, kind: input, shape index: {}]   ;;  %s596_s1 = inlined_call_operand.hbm [shape: f32[128,128], index: 1, kind: input, shape index: {}]   ;;  %s597_s2 = inlined_call_operand.vmem [shape: f32[1,128], index: 2, kind: input, shape index: {}]   ;;  %s598_s3 = inlined_call_operand.hbm [shape: f32[128,128], index: 3, kind: input, shape index: {}]   ;;  %s599_s4 = inlined_call_operand.vmem [shape: s32[8,1], index: 4, kind: input, shape index: {}]   ;;  %s600_s5 = inlined_call_operand.hbm [shape: f32[8,128], index: 5, kind: output, shape index: {}]  }
   0x1   :  { %11 = vsyncpa [#allocation6], 0 }
   0x2   :  { %12 = vsyncpa [#allocation4], 0  ;;  %s494_s18 = smov [#allocation2]   ;;  %s422_s22 = scalar_lea.hbm %s596_s1, 2048 }
   0x3   :  { %s20_s19 = sshll.u32 %s494_s18, 4  ;;  %p423_p0 = scmp.ne.s32.totalorder %s596_s1, %s422_s22  ;;  %s21_s19 = int_to_ptr.vmem [resolvable:$true] %s20_s19 }
   0x4   :  { %p426_p1 = scmp.lt.u32.totalorder %s422_s22, %s596_s1 }
   0x6   :  { %p428_p2 = pnand %p426_p1, %p423_p0 }
   0x8   :  { %431 = shalt.err (!%p428_p2)
}
   0x9   :  { %s432_s27 = scalar_lea.vmem %s21_s19, 2048  ;;  %p437_p4 = scmp.lt.s32.totalorder %s21_s19, %s21_s19 }
   0xa   :  { %p433_p3 = scmp.ne.s32.totalorder %s21_s19, %s432_s27  ;;  %p438_p5 = scmp.lt.s32.totalorder %s432_s27, %s432_s27 }
   0xc   :  { %p439_p6 = por %p438_p5, %p437_p4 }
   0xe   :  { %p440_p7 = pnand %p439_p6, %p433_p3 }
  0x10   :  { %443 = shalt.err (!%p440_p7)
}
  0x11   :  { %s495_s28 = smov 128   ;;  %s496_s29 = smov 8  }
  0x12   :  { %26 = dma.hbm_to_vmem [thread:$0]  %s596_s1, 2048, %s21_s19, [#allocation3], %s495_s28, %s495_s28, %s496_s29  }
  0x13   :  { %s497_s7 = smov [#allocation5]   ;;  %s444_s11 = scalar_lea.hbm %s598_s3, 2048 }
  0x14   :  { %s34_s8 = sshll.u32 %s497_s7, 4  ;;  %p445_p8 = scmp.ne.s32.totalorder %s598_s3, %s444_s11  ;;  %s35_s8 = int_to_ptr.vmem [resolvable:$true] %s34_s8 }
  0x15   :  { %p448_p9 = scmp.lt.u32.totalorder %s444_s11, %s598_s3 }
  0x17   :  { %p450_p10 = pnand %p448_p9, %p445_p8 }
  0x19   :  { %453 = shalt.err (!%p450_p10)
}
  0x1a   :  { %s454_s16 = scalar_lea.vmem %s35_s8, 2048  ;;  %p459_p12 = scmp.lt.s32.totalorder %s35_s8, %s35_s8 }
  0x1b   :  { %p455_p11 = scmp.ne.s32.totalorder %s35_s8, %s454_s16  ;;  %p460_p13 = scmp.lt.s32.totalorder %s454_s16, %s454_s16 }
  0x1d   :  { %p461_p0 = por %p460_p13, %p459_p12 }
  0x1f   :  { %p462_p1 = pnand %p461_p0, %p455_p11 }
  0x21   :  { %465 = shalt.err (!%p462_p1)
}
  0x22   :  { %40 = dma.hbm_to_vmem [thread:$0]  %s598_s3, 2048, %s35_s8, [#allocation6], %s495_s28, %s495_s28, %s496_s29  }
  0x23   :  { %488 = dma.done.wait [#allocation3], 2048  }
  0x24   :  { %489 = vsyncadd [#allocation3], 4294965248 }
  0x25   :  { %490 = dma.done.wait [#allocation6], 2048  }
  0x26   :  { %491 = vsyncadd [#allocation6], 4294965248  ;;  %v498_v0 = vmov 0   ;;  %v499_v1 = vmov 0.0|0.0   ;;  %vm500_vm0 = vmmov 0   ;;  %v501_v2 = vmov 0.0  }
  0x27   :  { %421 = vset.pattern.permute.xlu0 %v498_v0  ;;  %363 = vmatprep.subr.bf16.mxu0 %v499_v1  ;;  %v143_v3 = vld [vmem:[%s599_s4] sm:$0xff]  ;;  %v51_v5 = vld [vmem:[#allocation2 + $0x8] sm:$0xff]  ;;  %v52_v9 = vld [vmem:[#allocation2 + $0x10] sm:$0xff]  ;;  %v144_v53 = vlaneseq  ;;  %v502_v56 = vmov 1.0   ;;  %s503_s22 = smov [#allocation7]  }
  0x28   :  { %387 = vmatprep.subr.bf16.mxu1 %v499_v1  ;;  %325 = vmatprep.mubr.msk.f32.mxu0 %vm500_vm0, %v501_v2  ;;  %v50_v4 = vld [vmem:[#allocation2] sm:$0xff]  ;;  %v153_v8 = vld [vmem:[#allocation5 + $0x8] sm:$0xff]  ;;  %v53_v11 = vld [vmem:[#allocation2 + $0x18] sm:$0xff]  ;;  %s246_s23 = sshll.u32 %s503_s22, 4  ;;  %s247_s23 = int_to_ptr.vmem [resolvable:$true] %s246_s23 }
  0x29   :  { %360 = vmatprep.mubr.msk.f32.mxu1 %vm500_vm0, %v501_v2  ;;  %147 = vperm.xlu0 %421, %v143_v3   ;;  %v364_v6 = vpack.c.bf16 %v51_v5, %v50_v4  ;;  %v152_v7 = vld [vmem:[#allocation5] sm:$0xff]  ;;  %v154_v12 = vld [vmem:[#allocation5 + $0x10] sm:$0xff]  ;;  %v155_v13 = vld [vmem:[#allocation5 + $0x18] sm:$0xff]  ;;  %v367_v14 = vpack.c.bf16 %v53_v11, %v52_v9  ;;  %v145_v54 = vand.u32 127, %v144_v53  ;;  %p471_p3 = scmp.lt.s32.totalorder %s247_s23, %s247_s23 }
  0x2a   :  { %v388_v10 = vpack.c.bf16 %v153_v8, %v152_v7  ;;  %v391_v15 = vpack.c.bf16 %v155_v13, %v154_v12  ;;  %v54_v16 = vld [vmem:[#allocation2 + $0x20] sm:$0xff]  ;;  %v55_v17 = vld [vmem:[#allocation2 + $0x28] sm:$0xff]  ;;  %v56_v22 = vld [vmem:[#allocation2 + $0x30] sm:$0xff] }
  0x2b   :  { %365 = vmatpush3.bf16.msra.mxu0 %v364_v6  ;;  %v156_v18 = vld [vmem:[#allocation5 + $0x20] sm:$0xff]  ;;  %v157_v19 = vld [vmem:[#allocation5 + $0x28] sm:$0xff]  ;;  %v370_v20 = vpack.c.bf16 %v55_v17, %v54_v16  ;;  %v57_v23 = vld [vmem:[#allocation2 + $0x38] sm:$0xff] }
  0x2c   :  { %366 = vmatprep.subr.bf16.mxu0 %v499_v1  ;;  %389 = vmatpush3.bf16.msra.mxu1 %v388_v10  ;;  %v394_v21 = vpack.c.bf16 %v157_v19, %v156_v18  ;;  %v158_v24 = vld [vmem:[#allocation5 + $0x30] sm:$0xff]  ;;  %v159_v25 = vld [vmem:[#allocation5 + $0x38] sm:$0xff]  ;;  %v373_v26 = vpack.c.bf16 %v57_v23, %v56_v22  ;;  %v58_v28 = vld [vmem:[#allocation2 + $0x40] sm:$0xff] }
  0x2d   :  { %390 = vmatprep.subr.bf16.mxu1 %v499_v1  ;;  %v397_v27 = vpack.c.bf16 %v159_v25, %v158_v24  ;;  %v59_v29 = vld [vmem:[#allocation2 + $0x48] sm:$0xff]  ;;  %v160_v30 = vld [vmem:[#allocation5 + $0x40] sm:$0xff]  ;;  %v60_v34 = vld [vmem:[#allocation2 + $0x50] sm:$0xff] }
  0x2e   :  { %v161_v31 = vld [vmem:[#allocation5 + $0x48] sm:$0xff]  ;;  %v376_v32 = vpack.c.bf16 %v59_v29, %v58_v28  ;;  %v61_v35 = vld [vmem:[#allocation2 + $0x58] sm:$0xff]  ;;  %v162_v36 = vld [vmem:[#allocation5 + $0x50] sm:$0xff] }
  0x2f   :  { %368 = vmatpush3.bf16.msra.mxu0 %v367_v14  ;;  %v400_v33 = vpack.c.bf16 %v161_v31, %v160_v30  ;;  %v163_v37 = vld [vmem:[#allocation5 + $0x58] sm:$0xff]  ;;  %v379_v38 = vpack.c.bf16 %v61_v35, %v60_v34  ;;  %v62_v40 = vld [vmem:[#allocation2 + $0x60] sm:$0xff]  ;;  %v63_v41 = vld [vmem:[#allocation2 + $0x68] sm:$0xff] }
  0x30   :  { %369 = vmatprep.subr.bf16.mxu0 %v499_v1  ;;  %392 = vmatpush3.bf16.msra.mxu1 %v391_v15  ;;  %v403_v39 = vpack.c.bf16 %v163_v37, %v162_v36  ;;  %v164_v42 = vld [vmem:[#allocation5 + $0x60] sm:$0xff]  ;;  %v165_v43 = vld [vmem:[#allocation5 + $0x68] sm:$0xff]  ;;  %v382_v44 = vpack.c.bf16 %v63_v41, %v62_v40  ;;  %v64_v46 = vld [vmem:[#allocation2 + $0x70] sm:$0xff] }
  0x31   :  { %393 = vmatprep.subr.bf16.mxu1 %v499_v1  ;;  %v406_v45 = vpack.c.bf16 %v165_v43, %v164_v42  ;;  %v65_v47 = vld [vmem:[#allocation2 + $0x78] sm:$0xff]  ;;  %v166_v48 = vld [vmem:[#allocation5 + $0x70] sm:$0xff]  ;;  %v49_v52 = vld [vmem:[%s595_s0] sm:$0xff]  ;;  %s466_s0 = scalar_lea.vmem %s247_s23, 128 }
  0x32   :  { %v167_v49 = vld [vmem:[#allocation5 + $0x78] sm:$0xff]  ;;  %v385_v50 = vpack.c.bf16 %v65_v47, %v64_v46  ;;  %v256_v59 = vld [vmem:[%s597_s2] ss:$0 sm:$0xff]  ;;  %p467_p2 = scmp.ne.s32.totalorder %s247_s23, %s466_s0  ;;  %p472_p4 = scmp.lt.s32.totalorder %s466_s0, %s466_s0 }
  0x33   :  { %371 = vmatpush3.bf16.msra.mxu0 %v370_v20  ;;  %v409_v51 = vpack.c.bf16 %v167_v49, %v166_v48 }
  0x34   :  { %372 = vmatprep.subr.bf16.mxu0 %v499_v1  ;;  %395 = vmatpush3.bf16.msra.mxu1 %v394_v21  ;;  %p473_p5 = por %p472_p4, %p471_p3 }
  0x35   :  { %396 = vmatprep.subr.bf16.mxu1 %v499_v1 }
  0x36   :  { %p474_p6 = pnand %p473_p5, %p467_p2 }
  0x37   :  { %374 = vmatpush3.bf16.msra.mxu0 %v373_v26 }
  0x38   :  { %375 = vmatprep.subr.bf16.mxu0 %v499_v1  ;;  %398 = vmatpush3.bf16.msra.mxu1 %v397_v27 }
  0x39   :  { %399 = vmatprep.subr.bf16.mxu1 %v499_v1 }
  0x3b   :  { %377 = vmatpush3.bf16.msra.mxu0 %v376_v32 }
  0x3c   :  { %378 = vmatprep.subr.bf16.mxu0 %v499_v1  ;;  %401 = vmatpush3.bf16.msra.mxu1 %v400_v33 }
  0x3d   :  { %402 = vmatprep.subr.bf16.mxu1 %v499_v1 }
  0x3f   :  { %380 = vmatpush3.bf16.msra.mxu0 %v379_v38 }
  0x40   :  { %381 = vmatprep.subr.bf16.mxu0 %v499_v1  ;;  %404 = vmatpush3.bf16.msra.mxu1 %v403_v39 }
  0x41   :  { %405 = vmatprep.subr.bf16.mxu1 %v499_v1 }
  0x43   :  { %383 = vmatpush3.bf16.msra.mxu0 %v382_v44 }
  0x44   :  { %384 = vmatprep.subr.bf16.mxu0 %v499_v1  ;;  %407 = vmatpush3.bf16.msra.mxu1 %v406_v45 }
  0x45   :  { %408 = vmatprep.subr.bf16.mxu1 %v499_v1 }
  0x47   :  { %386 = vmatpush3.bf16.msra.mxu0 %v385_v50 }
  0x48   :  { %410 = vmatpush3.bf16.msra.mxu1 %v409_v51 }
  0x4a   :  { %326 = vmatmul.mubr.f32.vlgmr.msra.gmra.mrb[0].mxu0 %v49_v52 }
  0xa8   :  { %v148_v55 = vpop.permute.xlu0 %147 }
  0xa9   :  { %vm149_vm1 = vcmp.eq.s32.totalorder %v148_v55, %v145_v54 }
  0xaa   :  { %361 = vmatmul.mubr.msk.f32.vlgmr.msra.gmra.mrb[0].mxu1 %vm149_vm1, %v502_v56 }
 0x11d   :  { %v139_v57 = vpop.f32.mrb[0].mxu0 }
 0x11e   :  { %v327_v58 = vpop.f32.mrb[1].mxu0  ;;  %v140_v60 = vadd.f32 %v256_v59, %v139_v57 }
 0x17d   :  { %v234_v61 = vpop.f32.mrb[0].mxu1 }
 0x17e   :  { %v238_v62 = vmul.f32 %v234_v61, %v140_v60  ;;  %v362_v63 = vpop.f32.mrb[1].mxu1 }
 0x180   :  { %239 = vst [vmem:[#allocation7] sm:$0xff] %v238_v62 }
 0x181   :  { %477 = shalt.err (!%p474_p6)
}
 0x182   :  { %s478_s26 = scalar_lea.hbm %s600_s5, 128 }
 0x183   :  { %p479_p7 = scmp.ne.s32.totalorder %s600_s5, %s478_s26  ;;  %p482_p8 = scmp.lt.u32.totalorder %s478_s26, %s600_s5 }
 0x185   :  { %p484_p9 = pnand %p482_p8, %p479_p7 }
 0x187   :  { %487 = shalt.err (!%p484_p9)
}
 0x188   :  { %249 = dma.vmem_to_hbm [thread:$0]  %s247_s23, 128, %s600_s5, [#allocation4]  }
 0x189   :  { %492 = dma.done.wait [#allocation4], 128  }
 0x18a   :  { %493 = vsyncadd [#allocation4], 4294967168 }
 0x18b   :  { %253 = vsyncpa [#allocation3], 1 }
 0x18c   :  { %254 = vsyncpa [#allocation6], 1 }
 0x18d   :  { %255 = vsyncpa [#allocation4], 1 }

</bundles_post_ra>
